<compile_context>
chip_gen: v5e
topology: v5e:2x2
jax: 0.10.0
libtpu: 0.0.40
codegen_flags: <defaults>
</compile_context>

<pallas_src>
import jax
import jax.numpy as jnp
from jax.experimental import pallas as pl
from jax.experimental.pallas import tpu as pltpu


LANE = 128  # TPU lane width; pad node / channel dims to multiples of this.
# TODO(synk): on v6e/v7x with real hidden sizes (>=256 ch) pad channels to a
# multiple of 256 to fill the 2x256^2 MXU; 128 is native on v5e.


def _round_up(v, m):
    return ((v + m - 1) // m) * m


def _pad_ch(c):
    return _round_up(max(c, 1), LANE)


# ----------------------------------------------------------------------------
# Fused Pallas kernel: whole GCN stack in one call
#   layer l:  H <- act( A_hat @ (H @ W_l) + b_l )
# A_hat (single-buffered), weights and the bf16 activation ping buffer stay
# resident in VMEM; only the final bf16 X is written back to HBM.
# ----------------------------------------------------------------------------
def _make_fused_kernel(padded_cfgs):
    n_layers = len(padded_cfgs)

    def kernel(*refs):
        a_hbm = refs[0]                       # (Np, Np) bf16, HBM (pl.ANY)
        x_ref = refs[1]                       # (Np, Cin0p) bf16
        w_refs = refs[2:2 + n_layers]         # (Cinp_l, Coutp_l) bf16 each
        b_refs = refs[2 + n_layers:2 + 2 * n_layers]   # (1, Coutp_l) f32 each
        o_ref = refs[2 + 2 * n_layers]        # (Np, Coutp_last) bf16
        a_vmem = refs[3 + 2 * n_layers]       # scratch (Np, Np) bf16
        h_ref = refs[4 + 2 * n_layers]        # scratch (Np, Hw) bf16

        # Single-buffered manual copy of the O(N^2) operand HBM -> VMEM.
        pltpu.sync_copy(a_hbm, a_vmem)
        a = a_vmem[...]                       # (Np, Np) bf16

        for l, (cin_p, cout_p, apply_relu) in enumerate(padded_cfgs):
            x_bf = x_ref[...] if l == 0 else h_ref[:, :cin_p]   # bf16
            w = w_refs[l][...]                                  # bf16
            if cin_p <= cout_p:
                # (A_hat @ X) @ W : N^2-sized product against the narrow side
                ax = jnp.dot(a, x_bf, preferred_element_type=jnp.float32)
                y = jnp.dot(ax.astype(jnp.bfloat16), w,
                            preferred_element_type=jnp.float32)
            else:
                # A_hat @ (X @ W)
                xw = jnp.dot(x_bf, w, preferred_element_type=jnp.float32)
                y = jnp.dot(a, xw.astype(jnp.bfloat16),
                            preferred_element_type=jnp.float32)
            y = y + b_refs[l][...]            # f32 bias add (broadcast)
            if apply_relu:
                y = jnp.maximum(y, 0.0)
            y_bf = y.astype(jnp.bfloat16)     # single downcast at the store
            if l == n_layers - 1:
                o_ref[...] = y_bf             # final layer -> output directly
            else:
                h_ref[:, :cout_p] = y_bf      # bf16 resident activation

    return kernel


def fused_gcn_forward(a_p, x_p, w_ps, b_ps, padded_cfgs):
    """One Pallas call for the whole GCN stack. All operands pre-padded.

    Returns the padded (Np, Coutp_last) bf16 output; caller slices/casts.
    """
    np_ = a_p.shape[0]
    n_layers = len(padded_cfgs)
    out_pad = padded_cfgs[-1][1]

    # Width of the intermediate-activation scratch (bf16).
    inter = [cop for (_, cop, _) in padded_cfgs[:-1]]
    h_width = max(inter) if inter else LANE

    # Resident VMEM set (A single-buffered; auto-pipelined inputs/outputs
    # double-buffered by BlockSpec).
    resident = (np_ * np_ * 2                          # A_hat scratch
                + np_ * h_width * 2                    # activation scratch
                + 2 * x_p.size * 2                     # X
                + 2 * sum(w.size for w in w_ps) * 2    # W stack
                + 2 * sum(b.size for b in b_ps) * 4    # biases
                + 2 * np_ * out_pad * 2)               # output
    vmem_limit = int(min(100 * 1024 * 1024,
                         max(32 * 1024 * 1024, resident + 8 * 1024 * 1024)))

    flops = 0
    for (cip, cop, _) in padded_cfgs:
        flops += 2 * np_ * np_ * min(cip, cop) + 2 * np_ * cip * cop
    bytes_accessed = (a_p.size * 2 + x_p.size * 2
                      + sum(w.size for w in w_ps) * 2
                      + sum(b.size for b in b_ps) * 4
                      + np_ * out_pad * 2)

    in_specs = [pl.BlockSpec(memory_space=pl.ANY),            # A_hat in HBM
                pl.BlockSpec(x_p.shape, lambda i: (0, 0))]    # X
    for w in w_ps:
        in_specs.append(pl.BlockSpec(w.shape, lambda i: (0, 0)))
    for b in b_ps:
        in_specs.append(pl.BlockSpec(b.shape, lambda i: (0, 0)))

    kernel = _make_fused_kernel(tuple(padded_cfgs))
    out_p = pl.pallas_call(
        kernel,
        out_shape=jax.ShapeDtypeStruct((np_, out_pad), jnp.bfloat16),
        grid=(1,),
        in_specs=in_specs,
        out_specs=pl.BlockSpec((np_, out_pad), lambda i: (0, 0)),
        scratch_shapes=[pltpu.VMEM((np_, np_), jnp.bfloat16),      # A_hat
                        pltpu.VMEM((np_, h_width), jnp.bfloat16)], # activations
        compiler_params=pltpu.CompilerParams(
            dimension_semantics=("arbitrary",),
            vmem_limit_bytes=vmem_limit),
        cost_estimate=pl.CostEstimate(flops=flops, transcendentals=0,
                                      bytes_accessed=bytes_accessed),
    )(a_p, x_p, *w_ps, *b_ps)

    return out_p


# ----------------------------------------------------------------------------
# JAX glue: normalized adjacency, layer wiring, parameter construction,
# one-time padding/packing (hoisted out of the per-step path).
# ----------------------------------------------------------------------------
def gcn_norm_dense(edge_index, num_nodes):
    """Dense D^{-1/2} (A + I) D^{-1/2} matching PyG gcn_norm (edge_weight=1)."""
    src, dst = edge_index[0], edge_index[1]
    a = jnp.zeros((num_nodes, num_nodes), jnp.float32)
    # message flows source -> target: A[target, source] accumulates edge weight
    a = a.at[dst, src].add(1.0)
    a = a + jnp.eye(num_nodes, dtype=jnp.float32)    # add_self_loops
    deg = a.sum(axis=1)                               # in-degree incl. self loop
    dinv = jnp.where(deg > 0.0, jax.lax.rsqrt(deg), 0.0)
    return a * dinv[:, None] * dinv[None, :]


def prepare_adjacency(edge_index, num_nodes, np_):
    """Build + pad A_hat once per graph (cache and reuse across steps)."""
    a_hat = gcn_norm_dense(edge_index, num_nodes)
    return jnp.zeros((np_, np_), jnp.bfloat16).at[:num_nodes, :num_nodes].set(
        a_hat.astype(jnp.bfloat16))


def pack_model(x, params, configs):
    """Pad node features, weights and biases once; per-layer channel padding."""
    n, c0 = x.shape
    np_ = _round_up(max(n, 8), LANE)
    c0p = _pad_ch(c0)
    x_p = jnp.zeros((np_, c0p), jnp.bfloat16).at[:n, :c0].set(
        x.astype(jnp.bfloat16))
    w_ps, b_ps, padded_cfgs = [], [], []
    for (w, b), (cin, cout, apply_act) in zip(params, configs):
        cip, cop = _pad_ch(cin), _pad_ch(cout)
        w_ps.append(jnp.zeros((cip, cop), jnp.bfloat16).at[:cin, :cout].set(
            w.astype(jnp.bfloat16)))
        b_ps.append(jnp.zeros((1, cop), jnp.float32).at[0, :cout].set(
            b.astype(jnp.float32)))
        padded_cfgs.append((cip, cop, apply_act))
    return np_, x_p, w_ps, b_ps, tuple(padded_cfgs)


def _glorot(key, fan_in, fan_out):
    limit = (6.0 / (fan_in + fan_out)) ** 0.5
    return jax.random.uniform(key, (fan_in, fan_out), jnp.float32,
                              minval=-limit, maxval=limit)


def build_layer_configs(layer_name_list, num_layers_list, in_channels,
                        hidden_channels, out_channels, activate_last=True):
    """Replicates GraphEncoderSequential's channel wiring / activation flags
    for GCNConv encoders (use_x_0=False, no bn/gn/skip/dropout in eval)."""
    assert len(layer_name_list) == len(num_layers_list)
    num_encoders = len(layer_name_list)
    configs = []
    for i, (name, num_layers) in enumerate(zip(layer_name_list,
                                               num_layers_list)):
        assert name == 'GCNConv'  # this script instantiates GCN encoders
        enc_in = in_channels if i == 0 else hidden_channels
        enc_out = hidden_channels if i != num_encoders - 1 else out_channels
        enc_act_last = True if i != num_encoders - 1 else activate_last
        for conv_id in range(num_layers):
            cin = enc_in if conv_id == 0 else hidden_channels
            cout = hidden_channels if conv_id != num_layers - 1 else enc_out
            apply_act = (conv_id != num_layers - 1) or enc_act_last
            configs.append((cin, cout, apply_act))
    return configs


def init_params(key, configs):
    params = []
    for (cin, cout, _) in configs:
        key, wk = jax.random.split(key)
        w = _glorot(wk, cin, cout)            # GCNConv: glorot weight
        b = jnp.zeros((cout,), jnp.float32)   # GCNConv: zero bias
        params.append((w, b))
    return params


def graph_encoder_sequential_forward(x, edge_index, params, configs):
    """Convenience one-shot forward (builds + pads everything per call).
    For repeated steps, call pack_model / prepare_adjacency once and reuse."""
    n = x.shape[0]
    c_out_final = configs[-1][1]
    np_, x_p, w_ps, b_ps, padded_cfgs = pack_model(x, params, configs)
    a_p = prepare_adjacency(edge_index, n, np_)
    out_p = fused_gcn_forward(a_p, x_p, w_ps, b_ps, padded_cfgs)
    return out_p[:n, :c_out_final].astype(jnp.float32)


# ----------------------------------------------------------------------------
if __name__ == "__main__":
    key = jax.random.PRNGKey(0)

    # Small synthetic graph: 16 nodes, 8 input features, hidden 32, out 16.
    N, IN_CH, HID_CH, OUT_CH = 16, 8, 32, 16
    NUM_EDGES = 40

    layer_name_list = ['GCNConv', 'GCNConv']
    num_layers_list = [2, 2]

    k_x, k_src, k_dst, k_par = jax.random.split(key, 4)
    x = jax.random.normal(k_x, (N, IN_CH), jnp.float32)
    src = jax.random.randint(k_src, (NUM_EDGES,), 0, N)
    dst = jax.random.randint(k_dst, (NUM_EDGES,), 0, N)
    edge_index = jnp.stack([src, dst], axis=0)  # (2, E)

    configs = build_layer_configs(layer_name_list, num_layers_list,
                                  IN_CH, HID_CH, OUT_CH, activate_last=True)
    params = init_params(k_par, configs)

    # --- one-time packing / adjacency build (cached across steps) -----------
    np_, x_p, w_ps, b_ps, padded_cfgs = pack_model(x, params, configs)
    a_p = prepare_adjacency(edge_index, N, np_)

    # Per-step work is only the fused Pallas call.
    fwd = jax.jit(lambda a, xx, ws, bs: fused_gcn_forward(a, xx, ws, bs,
                                                          padded_cfgs))
    out_p = jax.block_until_ready(fwd(a_p, x_p, w_ps, b_ps))
    out = out_p[:N, :OUT_CH].astype(jnp.float32)

    assert out.shape == (N, OUT_CH), out.shape
    assert bool(jnp.all(jnp.isfinite(out)))

    print("KERNEL_OK")
</pallas_src>

<mosaic_0001>
module attributes {stable_mosaic.version = 11 : i64} {
  func.func @kernel(%arg0: i32, %arg1: memref<128x128xbf16, #tpu.memory_space<any>>, %arg2: memref<128x128xbf16, #tpu.memory_space<vmem>>, %arg3: memref<128x128xbf16, #tpu.memory_space<vmem>>, %arg4: memref<128x128xbf16, #tpu.memory_space<vmem>>, %arg5: memref<128x128xbf16, #tpu.memory_space<vmem>>, %arg6: memref<128x128xbf16, #tpu.memory_space<vmem>>, %arg7: memref<1x128xf32, #tpu.memory_space<vmem>>, %arg8: memref<1x128xf32, #tpu.memory_space<vmem>>, %arg9: memref<1x128xf32, #tpu.memory_space<vmem>>, %arg10: memref<1x128xf32, #tpu.memory_space<vmem>>, %arg11: memref<128x128xbf16, #tpu.memory_space<vmem>>, %arg12: memref<128x128xbf16, #tpu.memory_space<vmem>>, %arg13: memref<128x128xbf16, #tpu.memory_space<vmem>>) attributes {dimension_semantics = [#tpu.dimension_semantics<arbitrary>], iteration_bounds = array<i64: 1>, scalar_prefetch = 0 : i64, scratch_operands = 2 : i64, tpu.core_type = #tpu.core_type<tc>, window_params = [{}, {pipeline_mode = #tpu.pipeline_mode<synchronous>, transform_indices = @transform_1, window_bounds = array<i64: 128, 128>}, {pipeline_mode = #tpu.pipeline_mode<synchronous>, transform_indices = @transform_2, window_bounds = array<i64: 128, 128>}, {pipeline_mode = #tpu.pipeline_mode<synchronous>, transform_indices = @transform_3, window_bounds = array<i64: 128, 128>}, {pipeline_mode = #tpu.pipeline_mode<synchronous>, transform_indices = @transform_4, window_bounds = array<i64: 128, 128>}, {pipeline_mode = #tpu.pipeline_mode<synchronous>, transform_indices = @transform_5, window_bounds = array<i64: 128, 128>}, {pipeline_mode = #tpu.pipeline_mode<synchronous>, transform_indices = @transform_6, window_bounds = array<i64: 1, 128>}, {pipeline_mode = #tpu.pipeline_mode<synchronous>, transform_indices = @transform_7, window_bounds = array<i64: 1, 128>}, {pipeline_mode = #tpu.pipeline_mode<synchronous>, transform_indices = @transform_8, window_bounds = array<i64: 1, 128>}, {pipeline_mode = #tpu.pipeline_mode<synchronous>, transform_indices = @transform_9, window_bounds = array<i64: 1, 128>}, {pipeline_mode = #tpu.pipeline_mode<synchronous>, transform_indices = @transform_10, window_bounds = array<i64: 128, 128>}]} {
    "tpu.region"() ({
      %49 = tpu.sem_alloc : memref<!tpu.dma_semaphore, #tpu.memory_space<semaphore_mem>>
      tpu.enqueue_dma source(%arg1 : memref<128x128xbf16, #tpu.memory_space<any>>) target(%arg12 : memref<128x128xbf16, #tpu.memory_space<vmem>>) target_semaphore(%49 : memref<!tpu.dma_semaphore, #tpu.memory_space<semaphore_mem>>)
      tpu.wait_dma2 semaphore(%49 : memref<!tpu.dma_semaphore, #tpu.memory_space<semaphore_mem>>) src(%arg1 : memref<128x128xbf16, #tpu.memory_space<any>>) dst(%arg12 : memref<128x128xbf16, #tpu.memory_space<vmem>>)
      tpu.yield
    }) : () -> ()
    %c0 = arith.constant 0 : index
    %c0_0 = arith.constant 0 : index
    %0 = vector.load %arg12[%c0, %c0_0] : memref<128x128xbf16, #tpu.memory_space<vmem>>, vector<128x128xbf16>
    %c0_1 = arith.constant 0 : index
    %c0_2 = arith.constant 0 : index
    %1 = vector.load %arg2[%c0_1, %c0_2] : memref<128x128xbf16, #tpu.memory_space<vmem>>, vector<128x128xbf16>
    %c0_3 = arith.constant 0 : index
    %c0_4 = arith.constant 0 : index
    %2 = vector.load %arg3[%c0_3, %c0_4] : memref<128x128xbf16, #tpu.memory_space<vmem>>, vector<128x128xbf16>
    %cst = arith.constant dense<0.000000e+00> : vector<128x128xf32>
    %3 = tpu.matmul %0, %1, %cst {dimension_numbers = #tpu.dot_dimension_numbers<[1], [0], [0], [1], [0, 0, 1, 1], [], []>} : vector<128x128xbf16>, vector<128x128xbf16>, vector<128x128xf32> -> vector<128x128xf32>
    %4 = arith.truncf %3 : vector<128x128xf32> to vector<128x128xbf16>
    %cst_5 = arith.constant dense<0.000000e+00> : vector<128x128xf32>
    %5 = tpu.matmul %4, %2, %cst_5 {dimension_numbers = #tpu.dot_dimension_numbers<[1], [0], [0], [1], [0, 0, 1, 1], [], []>} : vector<128x128xbf16>, vector<128x128xbf16>, vector<128x128xf32> -> vector<128x128xf32>
    %c0_6 = arith.constant 0 : index
    %c0_7 = arith.constant 0 : index
    %6 = vector.load %arg7[%c0_6, %c0_7] : memref<1x128xf32, #tpu.memory_space<vmem>>, vector<1x128xf32>
    %7 = vector.broadcast %6 : vector<1x128xf32> to vector<128x128xf32>
    %8 = arith.addf %5, %7 : vector<128x128xf32>
    %cst_8 = arith.constant 0.000000e+00 : f32
    %9 = vector.broadcast %cst_8 : f32 to vector<128x128xf32>
    %10 = arith.maximumf %8, %9 : vector<128x128xf32>
    %11 = arith.truncf %10 : vector<128x128xf32> to vector<128x128xbf16>
    %c0_9 = arith.constant 0 : index
    %c0_10 = arith.constant 0 : index
    %12 = vector.load %arg13[%c0_9, %c0_10] : memref<128x128xbf16, #tpu.memory_space<vmem>>, vector<128x128xbf16>
    tpu.vector_store %arg13[%c0_9, %c0_10], %11 {strides = array<i32>} : memref<128x128xbf16, #tpu.memory_space<vmem>>, vector<128x128xbf16>,
    %c0_11 = arith.constant 0 : index
    %c0_12 = arith.constant 0 : index
    %13 = vector.load %arg13[%c0_11, %c0_12] : memref<128x128xbf16, #tpu.memory_space<vmem>>, vector<128x128xbf16>
    %c0_13 = arith.constant 0 : index
    %c0_14 = arith.constant 0 : index
    %14 = vector.load %arg4[%c0_13, %c0_14] : memref<128x128xbf16, #tpu.memory_space<vmem>>, vector<128x128xbf16>
    %cst_15 = arith.constant dense<0.000000e+00> : vector<128x128xf32>
    %15 = tpu.matmul %0, %13, %cst_15 {dimension_numbers = #tpu.dot_dimension_numbers<[1], [0], [0], [1], [0, 0, 1, 1], [], []>} : vector<128x128xbf16>, vector<128x128xbf16>, vector<128x128xf32> -> vector<128x128xf32>
    %16 = arith.truncf %15 : vector<128x128xf32> to vector<128x128xbf16>
    %cst_16 = arith.constant dense<0.000000e+00> : vector<128x128xf32>
    %17 = tpu.matmul %16, %14, %cst_16 {dimension_numbers = #tpu.dot_dimension_numbers<[1], [0], [0], [1], [0, 0, 1, 1], [], []>} : vector<128x128xbf16>, vector<128x128xbf16>, vector<128x128xf32> -> vector<128x128xf32>
    %c0_17 = arith.constant 0 : index
    %c0_18 = arith.constant 0 : index
    %18 = vector.load %arg8[%c0_17, %c0_18] : memref<1x128xf32, #tpu.memory_space<vmem>>, vector<1x128xf32>
    %19 = vector.broadcast %18 : vector<1x128xf32> to vector<128x128xf32>
    %20 = arith.addf %17, %19 : vector<128x128xf32>
    %cst_19 = arith.constant 0.000000e+00 : f32
    %21 = vector.broadcast %cst_19 : f32 to vector<128x128xf32>
    %22 = arith.maximumf %20, %21 : vector<128x128xf32>
    %23 = arith.truncf %22 : vector<128x128xf32> to vector<128x128xbf16>
    %c0_20 = arith.constant 0 : index
    %c0_21 = arith.constant 0 : index
    %24 = vector.load %arg13[%c0_20, %c0_21] : memref<128x128xbf16, #tpu.memory_space<vmem>>, vector<128x128xbf16>
    tpu.vector_store %arg13[%c0_20, %c0_21], %23 {strides = array<i32>} : memref<128x128xbf16, #tpu.memory_space<vmem>>, vector<128x128xbf16>,
    %c0_22 = arith.constant 0 : index
    %c0_23 = arith.constant 0 : index
    %25 = vector.load %arg13[%c0_22, %c0_23] : memref<128x128xbf16, #tpu.memory_space<vmem>>, vector<128x128xbf16>
    %c0_24 = arith.constant 0 : index
    %c0_25 = arith.constant 0 : index
    %26 = vector.load %arg5[%c0_24, %c0_25] : memref<128x128xbf16, #tpu.memory_space<vmem>>, vector<128x128xbf16>
    %cst_26 = arith.constant dense<0.000000e+00> : vector<128x128xf32>
    %27 = tpu.matmul %0, %25, %cst_26 {dimension_numbers = #tpu.dot_dimension_numbers<[1], [0], [0], [1], [0, 0, 1, 1], [], []>} : vector<128x128xbf16>, vector<128x128xbf16>, vector<128x128xf32> -> vector<128x128xf32>
    %28 = arith.truncf %27 : vector<128x128xf32> to vector<128x128xbf16>
    %cst_27 = arith.constant dense<0.000000e+00> : vector<128x128xf32>
    %29 = tpu.matmul %28, %26, %cst_27 {dimension_numbers = #tpu.dot_dimension_numbers<[1], [0], [0], [1], [0, 0, 1, 1], [], []>} : vector<128x128xbf16>, vector<128x128xbf16>, vector<128x128xf32> -> vector<128x128xf32>
    %c0_28 = arith.constant 0 : index
    %c0_29 = arith.constant 0 : index
    %30 = vector.load %arg9[%c0_28, %c0_29] : memref<1x128xf32, #tpu.memory_space<vmem>>, vector<1x128xf32>
    %31 = vector.broadcast %30 : vector<1x128xf32> to vector<128x128xf32>
    %32 = arith.addf %29, %31 : vector<128x128xf32>
    %cst_30 = arith.constant 0.000000e+00 : f32
    %33 = vector.broadcast %cst_30 : f32 to vector<128x128xf32>
    %34 = arith.maximumf %32, %33 : vector<128x128xf32>
    %35 = arith.truncf %34 : vector<128x128xf32> to vector<128x128xbf16>
    %c0_31 = arith.constant 0 : index
    %c0_32 = arith.constant 0 : index
    %36 = vector.load %arg13[%c0_31, %c0_32] : memref<128x128xbf16, #tpu.memory_space<vmem>>, vector<128x128xbf16>
    tpu.vector_store %arg13[%c0_31, %c0_32], %35 {strides = array<i32>} : memref<128x128xbf16, #tpu.memory_space<vmem>>, vector<128x128xbf16>,
    %c0_33 = arith.constant 0 : index
    %c0_34 = arith.constant 0 : index
    %37 = vector.load %arg13[%c0_33, %c0_34] : memref<128x128xbf16, #tpu.memory_space<vmem>>, vector<128x128xbf16>
    %c0_35 = arith.constant 0 : index
    %c0_36 = arith.constant 0 : index
    %38 = vector.load %arg6[%c0_35, %c0_36] : memref<128x128xbf16, #tpu.memory_space<vmem>>, vector<128x128xbf16>
    %cst_37 = arith.constant dense<0.000000e+00> : vector<128x128xf32>
    %39 = tpu.matmul %0, %37, %cst_37 {dimension_numbers = #tpu.dot_dimension_numbers<[1], [0], [0], [1], [0, 0, 1, 1], [], []>} : vector<128x128xbf16>, vector<128x128xbf16>, vector<128x128xf32> -> vector<128x128xf32>
    %40 = arith.truncf %39 : vector<128x128xf32> to vector<128x128xbf16>
    %cst_38 = arith.constant dense<0.000000e+00> : vector<128x128xf32>
    %41 = tpu.matmul %40, %38, %cst_38 {dimension_numbers = #tpu.dot_dimension_numbers<[1], [0], [0], [1], [0, 0, 1, 1], [], []>} : vector<128x128xbf16>, vector<128x128xbf16>, vector<128x128xf32> -> vector<128x128xf32>
    %c0_39 = arith.constant 0 : index
    %c0_40 = arith.constant 0 : index
    %42 = vector.load %arg10[%c0_39, %c0_40] : memref<1x128xf32, #tpu.memory_space<vmem>>, vector<1x128xf32>
    %43 = vector.broadcast %42 : vector<1x128xf32> to vector<128x128xf32>
    %44 = arith.addf %41, %43 : vector<128x128xf32>
    %cst_41 = arith.constant 0.000000e+00 : f32
    %45 = vector.broadcast %cst_41 : f32 to vector<128x128xf32>
    %46 = arith.maximumf %44, %45 : vector<128x128xf32>
    %47 = arith.truncf %46 : vector<128x128xf32> to vector<128x128xbf16>
    %c0_42 = arith.constant 0 : index
    %c0_43 = arith.constant 0 : index
    %48 = vector.load %arg11[%c0_42, %c0_43] : memref<128x128xbf16, #tpu.memory_space<vmem>>, vector<128x128xbf16>
    tpu.vector_store %arg11[%c0_42, %c0_43], %47 {strides = array<i32>} : memref<128x128xbf16, #tpu.memory_space<vmem>>, vector<128x128xbf16>,
    return
  }
  func.func @transform_1(%arg0: i32) -> (i32, i32) {
    %c0_i32 = arith.constant 0 : i32
    %c0_i32_0 = arith.constant 0 : i32
    %c0_i32_1 = arith.constant 0 : i32
    return %c0_i32, %c0_i32_0 : i32, i32
  }
  func.func @transform_2(%arg0: i32) -> (i32, i32) {
    %c0_i32 = arith.constant 0 : i32
    %c0_i32_0 = arith.constant 0 : i32
    %c0_i32_1 = arith.constant 0 : i32
    return %c0_i32, %c0_i32_0 : i32, i32
  }
  func.func @transform_3(%arg0: i32) -> (i32, i32) {
    %c0_i32 = arith.constant 0 : i32
    %c0_i32_0 = arith.constant 0 : i32
    %c0_i32_1 = arith.constant 0 : i32
    return %c0_i32, %c0_i32_0 : i32, i32
  }
  func.func @transform_4(%arg0: i32) -> (i32, i32) {
    %c0_i32 = arith.constant 0 : i32
    %c0_i32_0 = arith.constant 0 : i32
    %c0_i32_1 = arith.constant 0 : i32
    return %c0_i32, %c0_i32_0 : i32, i32
  }
  func.func @transform_5(%arg0: i32) -> (i32, i32) {
    %c0_i32 = arith.constant 0 : i32
    %c0_i32_0 = arith.constant 0 : i32
    %c0_i32_1 = arith.constant 0 : i32
    return %c0_i32, %c0_i32_0 : i32, i32
  }
  func.func @transform_6(%arg0: i32) -> (i32, i32) {
    %c0_i32 = arith.constant 0 : i32
    %c0_i32_0 = arith.constant 0 : i32
    %c0_i32_1 = arith.constant 0 : i32
    return %c0_i32, %c0_i32_0 : i32, i32
  }
  func.func @transform_7(%arg0: i32) -> (i32, i32) {
    %c0_i32 = arith.constant 0 : i32
    %c0_i32_0 = arith.constant 0 : i32
    %c0_i32_1 = arith.constant 0 : i32
    return %c0_i32, %c0_i32_0 : i32, i32
  }
  func.func @transform_8(%arg0: i32) -> (i32, i32) {
    %c0_i32 = arith.constant 0 : i32
    %c0_i32_0 = arith.constant 0 : i32
    %c0_i32_1 = arith.constant 0 : i32
    return %c0_i32, %c0_i32_0 : i32, i32
  }
  func.func @transform_9(%arg0: i32) -> (i32, i32) {
    %c0_i32 = arith.constant 0 : i32
    %c0_i32_0 = arith.constant 0 : i32
    %c0_i32_1 = arith.constant 0 : i32
    return %c0_i32, %c0_i32_0 : i32, i32
  }
  func.func @transform_10(%arg0: i32) -> (i32, i32) {
    %c0_i32 = arith.constant 0 : i32
    %c0_i32_0 = arith.constant 0 : i32
    %c0_i32_1 = arith.constant 0 : i32
    return %c0_i32, %c0_i32_0 : i32, i32
  }
}

</mosaic_0001>

<bundles_post_ra>
// kernel: _lambda_.1
= control target key start
LH: loop header
LB: loop body
LE: loop exit
PB: predicated region body
PF: predicated region fallthrough
CT: control target
= control target key end

     0   :  { %15 = vsyncpa [#allocation5], 0  ;;  %s2260_s0 = inlined_call_operand.hbm [shape: bf16[128,128], index: 0, kind: input, shape index: {}]   ;;  %s2261_s1 = inlined_call_operand.hbm [shape: bf16[128,128], index: 1, kind: input, shape index: {}]   ;;  %s2262_s2 = inlined_call_operand.hbm [shape: bf16[128,128], index: 2, kind: input, shape index: {}]   ;;  %s2263_s3 = inlined_call_operand.hbm [shape: bf16[128,128], index: 3, kind: input, shape index: {}]   ;;  %s2264_s4 = inlined_call_operand.hbm [shape: bf16[128,128], index: 4, kind: input, shape index: {}]   ;;  %s2265_s5 = inlined_call_operand.hbm [shape: bf16[128,128], index: 5, kind: input, shape index: {}]   ;;  %s2266_s6 = inlined_call_operand.vmem [shape: f32[1,128], index: 6, kind: input, shape index: {}]   ;;  %s2267_s7 = inlined_call_operand.vmem [shape: f32[1,128], index: 7, kind: input, shape index: {}]   ;;  %s2268_s8 = inlined_call_operand.vmem [shape: f32[1,128], index: 8, kind: input, shape index: {}]   ;;  %s2269_s9 = inlined_call_operand.vmem [shape: f32[1,128], index: 9, kind: input, shape index: {}]   ;;  %s2270_s10 = inlined_call_operand.hbm [shape: bf16[128,128], index: 10, kind: output, shape index: {}]  }
   0x1   :  { %16 = vsyncpa [#allocation8], 0 }
   0x2   :  { %17 = vsyncpa [#allocation11], 0 }
   0x3   :  { %18 = vsyncpa [#allocation6], 0  ;;  %s36_s15 = sshll.u32 %s2262_s2, 4  ;;  %s2097_s16 = smov [#allocation7]   ;;  %s37_s15 = int_to_ptr.hbm [resolvable:$true] %s36_s15 }
   0x4   :  { %s38_s17 = sshll.u32 %s2097_s16, 4  ;;  %s62_s20 = sshll.u32 %s2264_s4, 4  ;;  %s39_s17 = int_to_ptr.vmem [resolvable:$true] %s38_s17  ;;  %s63_s20 = int_to_ptr.hbm [resolvable:$true] %s62_s20 }
   0x5   :  { %s2098_s21 = smov 64   ;;  %s2099_s22 = smov 4  }
   0x6   :  { %44 = dma.hbm_to_vmem [thread:$0]  %s37_s15, 1024, %s39_s17, [#allocation8], %s2098_s21, %s2098_s21, %s2099_s22  }
   0x7   :  { %s2100_s23 = smov [#allocation10]   ;;  %s23_s2 = sshll.u32 %s2261_s1, 4  ;;  %s24_s2 = int_to_ptr.hbm [resolvable:$true] %s23_s2 }
   0x8   :  { %s64_s24 = sshll.u32 %s2100_s23, 4  ;;  %s49_s28 = sshll.u32 %s2263_s3, 4  ;;  %s65_s24 = int_to_ptr.vmem [resolvable:$true] %s64_s24  ;;  %s50_s28 = int_to_ptr.hbm [resolvable:$true] %s49_s28 }
   0x9   :  { %70 = dma.hbm_to_vmem [thread:$0]  %s63_s20, 1024, %s65_s24, [#allocation11], %s2098_s21, %s2098_s21, %s2099_s22  }
   0xa   :  { %s2101_s29 = smov [#allocation4]   ;;  %s2102_s11 = smov [#allocation9]  }
   0xb   :  { %s25_s30 = sshll.u32 %s2101_s29, 4  ;;  %s51_s1 = sshll.u32 %s2102_s11, 4  ;;  %s26_s30 = int_to_ptr.vmem [resolvable:$true] %s25_s30  ;;  %s52_s1 = int_to_ptr.vmem [resolvable:$true] %s51_s1 }
   0xc   :  { %31 = dma.hbm_to_vmem [thread:$0]  %s24_s2, 1024, %s26_s30, [#allocation5], %s2098_s21, %s2098_s21, %s2099_s22  }
   0xd   :  { %s75_s14 = sshll.u32 %s2265_s5, 4  ;;  %s2103_s3 = smov [#allocation12]   ;;  %s76_s14 = int_to_ptr.hbm [resolvable:$true] %s75_s14 }
   0xe   :  { %57 = dma.hbm_to_vmem [thread:$0]  %s50_s28, 1024, %s52_s1, [#allocation8], %s2098_s21, %s2098_s21, %s2099_s22  }
   0xf   :  { %s77_s15 = sshll.u32 %s2103_s3, 4  ;;  %s78_s15 = int_to_ptr.vmem [resolvable:$true] %s77_s15 }
  0x10   :  { %83 = dma.hbm_to_vmem [thread:$0]  %s76_s14, 1024, %s78_s15, [#allocation11], %s2098_s21, %s2098_s21, %s2099_s22  }
  0x11   :  { %2087 = dma.done.wait [#allocation5], 1024  }
  0x12   :  { %2088 = vsyncadd [#allocation5], 4294966272 }
  0x13   :  { %2089 = dma.done.wait [#allocation8], 2048  }
  0x14   :  { %2090 = vsyncadd [#allocation8], 4294965248 }
  0x15   :  { %2091 = dma.done.wait [#allocation11], 2048  }
  0x16   :  { %2092 = vsyncadd [#allocation11], 4294965248 }
  0x17   :  { %s119_s17 = sshll.u32 %s2260_s0, 4  ;;  %s2104_s18 = smov [#allocation2]   ;;  %s120_s17 = int_to_ptr.hbm [resolvable:$true] %s119_s17 }
  0x18   :  { %s121_s19 = sshll.u32 %s2104_s18, 4  ;;  %s122_s19 = int_to_ptr.vmem [resolvable:$true] %s121_s19 }
  0x19   :  { %124 = dma.hbm_to_vmem [thread:$0]  %s120_s17, 1024, %s122_s19, [#allocation14] }
  0x1a   :  { %2093 = dma.done.wait [#allocation14], 1024 }
  0x1b   :  { %2094 = vsyncadd [#allocation14], 4294966272  ;;  %v1661_v0 = vld [vmem:[#allocation4 + $0x38] sm:$0xff]  ;;  %v1660_v1 = vld [vmem:[#allocation4 + $0x30] sm:$0xff]  ;;  %s1343_s27 = sshll.u32 %s2270_s10, 4  ;;  %s1344_s27 = int_to_ptr.hbm [resolvable:$true] %s1343_s27 }
  0x1c   :  { %273 = vmatpush.bf16.msra.mxu0 %v1661_v0  ;;  %v1659_v2 = vld [vmem:[#allocation4 + $0x28] sm:$0xff]  ;;  %v1658_v3 = vld [vmem:[#allocation4 + $0x20] sm:$0xff]  ;;  %v1657_v4 = vld [vmem:[#allocation4 + $0x18] sm:$0xff] }
  0x1d   :  { %v1656_v5 = vld [vmem:[#allocation4 + $0x10] sm:$0xff]  ;;  %v1655_v6 = vld [vmem:[#allocation4 + $0x8] sm:$0xff]  ;;  %v1654_v7 = vld [vmem:[#allocation4] sm:$0xff] }
  0x1e   :  { %v2194_v8 = vld [vmem:[#allocation2] sm:$0xff]  ;;  %v2197_v9 = vld [vmem:[#allocation2 + $0x8] sm:$0xff]  ;;  %v2200_v10 = vld [vmem:[#allocation2 + $0x10] sm:$0xff] }
  0x1f   :  { %v2203_v11 = vld [vmem:[#allocation2 + $0x18] sm:$0xff]  ;;  %v2206_v12 = vld [vmem:[#allocation2 + $0x20] sm:$0xff]  ;;  %v1668_v14 = vld [vmem:[#allocation7 + $0x30] sm:$0xff] }
  0x20   :  { %274 = vmatpush.bf16.msra.mxu0 %v1660_v1  ;;  %v1669_v13 = vld [vmem:[#allocation7 + $0x38] sm:$0xff]  ;;  %v2209_v15 = vld [vmem:[#allocation2 + $0x28] sm:$0xff]  ;;  %v1666_v17 = vld [vmem:[#allocation7 + $0x20] sm:$0xff] }
  0x21   :  { %382 = vmatpush.bf16.msra.mxu1 %v1669_v13  ;;  %v1667_v16 = vld [vmem:[#allocation7 + $0x28] sm:$0xff]  ;;  %v1665_v18 = vld [vmem:[#allocation7 + $0x18] sm:$0xff]  ;;  %v1664_v19 = vld [vmem:[#allocation7 + $0x10] sm:$0xff] }
  0x22   :  { %v2212_v20 = vld [vmem:[#allocation2 + $0x30] sm:$0xff]  ;;  %v1663_v21 = vld [vmem:[#allocation7 + $0x8] sm:$0xff]  ;;  %v1662_v22 = vld [vmem:[#allocation7] sm:$0xff] }
  0x23   :  { %v2215_v23 = vld [vmem:[#allocation2 + $0x38] sm:$0xff]  ;;  %v1915_v49 = vld [vmem:[%s2266_s6] ss:$0 sm:$0xff] }
  0x24   :  { %275 = vmatpush.bf16.msra.mxu0 %v1659_v2 }
  0x25   :  { %383 = vmatpush.bf16.msra.mxu1 %v1668_v14 }
  0x28   :  { %276 = vmatpush.bf16.msra.mxu0 %v1658_v3 }
  0x29   :  { %384 = vmatpush.bf16.msra.mxu1 %v1667_v16 }
  0x2c   :  { %277 = vmatpush.bf16.msra.mxu0 %v1657_v4 }
  0x2d   :  { %385 = vmatpush.bf16.msra.mxu1 %v1666_v17 }
  0x30   :  { %278 = vmatpush.bf16.msra.mxu0 %v1656_v5 }
  0x31   :  { %386 = vmatpush.bf16.msra.mxu1 %v1665_v18 }
  0x34   :  { %279 = vmatpush.bf16.msra.mxu0 %v1655_v6 }
  0x35   :  { %387 = vmatpush.bf16.msra.mxu1 %v1664_v19 }
  0x38   :  { %280 = vmatpush.bf16.msra.mxu0 %v1654_v7 }
  0x39   :  { %388 = vmatpush.bf16.msra.mxu1 %v1663_v21 }
  0x3b   :  { %281 = vmatmul.bf16.vlgmr.msra.gmra.mxu0 %v2194_v8 }
  0x3d   :  { %389 = vmatpush.bf16.msra.mxu1 %v1662_v22 }
  0x4b   :  { %286 = vmatmul.bf16.gmra.mxu0 %v2197_v9 }
  0x5b   :  { %291 = vmatmul.bf16.gmra.mxu0 %v2200_v10 }
  0x6b   :  { %296 = vmatmul.bf16.gmra.mxu0 %v2203_v11 }
  0x7b   :  { %301 = vmatmul.bf16.gmra.mxu0 %v2206_v12 }
  0x8b   :  { %306 = vmatmul.bf16.gmra.mxu0 %v2209_v15 }
  0x9b   :  { %311 = vmatmul.bf16.gmra.mxu0 %v2212_v20 }
  0xab   :  { %316 = vmatmul.bf16.gmra.mxu0 %v2215_v23 }
  0xb8   :  { %v282_v24 = vpop.f32.mrf.mxu0 }
  0xc0   :  { %v284_v25 = vpop.f32.mrf.mxu0 }
  0xc1   :  { %v322_v26 = vpack.c.bf16 %v284_v25, %v282_v24 }
  0xc3   :  { %390 = vmatmul.bf16.vlgmr.msra.gmra.mxu1 %v322_v26 }
  0xc8   :  { %v287_v27 = vpop.f32.mrf.mxu0 }
  0xd0   :  { %v289_v28 = vpop.f32.mrf.mxu0 }
  0xd1   :  { %v323_v29 = vpack.c.bf16 %v289_v28, %v287_v27 }
  0xd3   :  { %395 = vmatmul.bf16.gmra.mxu1 %v323_v29 }
  0xd8   :  { %v292_v30 = vpop.f32.mrf.mxu0 }
  0xe0   :  { %v294_v31 = vpop.f32.mrf.mxu0 }
  0xe1   :  { %v324_v32 = vpack.c.bf16 %v294_v31, %v292_v30 }
  0xe3   :  { %400 = vmatmul.bf16.gmra.mxu1 %v324_v32 }
  0xe8   :  { %v297_v33 = vpop.f32.mrf.mxu0 }
  0xf0   :  { %v299_v34 = vpop.f32.mrf.mxu0 }
  0xf1   :  { %v325_v35 = vpack.c.bf16 %v299_v34, %v297_v33 }
  0xf3   :  { %405 = vmatmul.bf16.gmra.mxu1 %v325_v35 }
  0xf8   :  { %v302_v36 = vpop.f32.mrf.mxu0 }
 0x100   :  { %v304_v37 = vpop.f32.mrf.mxu0 }
 0x101   :  { %v326_v38 = vpack.c.bf16 %v304_v37, %v302_v36 }
 0x103   :  { %410 = vmatmul.bf16.gmra.mxu1 %v326_v38 }
 0x108   :  { %v307_v39 = vpop.f32.mrf.mxu0 }
 0x110   :  { %v309_v40 = vpop.f32.mrf.mxu0 }
 0x111   :  { %v327_v41 = vpack.c.bf16 %v309_v40, %v307_v39 }
 0x113   :  { %415 = vmatmul.bf16.gmra.mxu1 %v327_v41 }
 0x118   :  { %v312_v42 = vpop.f32.mrf.mxu0 }
 0x120   :  { %v314_v43 = vpop.f32.mrf.mxu0 }
 0x121   :  { %v328_v44 = vpack.c.bf16 %v314_v43, %v312_v42 }
 0x123   :  { %420 = vmatmul.bf16.gmra.mxu1 %v328_v44 }
 0x128   :  { %v317_v45 = vpop.f32.mrf.mxu0 }
 0x130   :  { %v319_v46 = vpop.f32.mrf.mxu0 }
 0x131   :  { %v329_v47 = vpack.c.bf16 %v319_v46, %v317_v45 }
 0x133   :  { %425 = vmatmul.bf16.gmra.mxu1 %v329_v47 }
 0x140   :  { %v391_v48 = vpop.f32.mrf.mxu1 }
 0x141   :  { %v392_v50 = vadd.f32 %v1915_v49, %v391_v48 }
 0x143   :  { %v431_v53 = vmax.f32 %v392_v50, 0.0 }
 0x148   :  { %v393_v51 = vpop.f32.mrf.mxu1 }
 0x149   :  { %v394_v52 = vadd.f32 %v1915_v49, %v393_v51 }
 0x14b   :  { %v432_v54 = vmax.f32 %v394_v52, 0.0 }
 0x14d   :  { %v1721_v55 = vpack.c.bf16 %v432_v54, %v431_v53 }
 0x14f   :  { %1722 = vst [vmem:[#allocation3 + $0x30] sm:$0xff] %v1721_v55  }
 0x150   :  { %v396_v56 = vpop.f32.mrf.mxu1 }
 0x151   :  { %v397_v57 = vadd.f32 %v1915_v49, %v396_v56 }
 0x153   :  { %v433_v60 = vmax.f32 %v397_v57, 0.0 }
 0x156   :  { %v1670_v57 = vld [vmem:[#allocation3 + $0x30] sm:$0xff] }
 0x158   :  { %v398_v58 = vpop.f32.mrf.mxu1 }
 0x159   :  { %v399_v59 = vadd.f32 %v1915_v49, %v398_v58  ;;  %v1684_v58 = vld [vmem:[#allocation9 + $0x30] sm:$0xff] }
 0x15b   :  { %v434_v61 = vmax.f32 %v399_v59, 0.0  ;;  %v1683_v59 = vld [vmem:[#allocation9 + $0x28] sm:$0xff] }
 0x15d   :  { %v1726_v62 = vpack.c.bf16 %v434_v61, %v433_v60  ;;  %v1682_v60 = vld [vmem:[#allocation9 + $0x20] sm:$0xff]  ;;  %v1681_v61 = vld [vmem:[#allocation9 + $0x18] sm:$0xff] }
 0x15f   :  { %1878 = vst [vmem:[#allocation3] sm:$0xff] %v1726_v62   ;;  %v1680_v62 = vld [vmem:[#allocation9 + $0x10] sm:$0xff] }
 0x160   :  { %v401_v63 = vpop.f32.mrf.mxu1 }
 0x161   :  { %v402_v0 = vadd.f32 %v1915_v49, %v401_v63  ;;  %v1679_v63 = vld [vmem:[#allocation9 + $0x8] sm:$0xff] }
 0x163   :  { %v435_v3 = vmax.f32 %v402_v0, 0.0  ;;  %v1678_v0 = vld [vmem:[#allocation9] sm:$0xff] }
 0x166   :  { %v1671_v56 = vld [vmem:[#allocation3] sm:$0xff] }
 0x168   :  { %v403_v1 = vpop.f32.mrf.mxu1 }
 0x169   :  { %v404_v2 = vadd.f32 %v1915_v49, %v403_v1 }
 0x16b   :  { %v436_v4 = vmax.f32 %v404_v2, 0.0 }
 0x16d   :  { %v1731_v5 = vpack.c.bf16 %v436_v4, %v435_v3 }
 0x16f   :  { %1879 = vst [vmem:[#allocation3 + $0x18] sm:$0xff] %v1731_v5  }
 0x170   :  { %v406_v6 = vpop.f32.mrf.mxu1 }
 0x171   :  { %v407_v7 = vadd.f32 %v1915_v49, %v406_v6 }
 0x173   :  { %v437_v16 = vmax.f32 %v407_v7, 0.0 }
 0x176   :  { %v1672_v55 = vld [vmem:[#allocation3 + $0x18] sm:$0xff] }
 0x178   :  { %v408_v13 = vpop.f32.mrf.mxu1 }
 0x179   :  { %v409_v14 = vadd.f32 %v1915_v49, %v408_v13 }
 0x17b   :  { %v438_v17 = vmax.f32 %v409_v14, 0.0 }
 0x17d   :  { %v1736_v18 = vpack.c.bf16 %v438_v17, %v437_v16 }
 0x17f   :  { %1880 = vst [vmem:[#allocation3 + $0x10] sm:$0xff] %v1736_v18  }
 0x180   :  { %v411_v19 = vpop.f32.mrf.mxu1 }
 0x181   :  { %v412_v21 = vadd.f32 %v1915_v49, %v411_v19 }
 0x183   :  { %v439_v25 = vmax.f32 %v412_v21, 0.0 }
 0x186   :  { %v1673_v54 = vld [vmem:[#allocation3 + $0x10] sm:$0xff] }
 0x188   :  { %v413_v22 = vpop.f32.mrf.mxu1 }
 0x189   :  { %v414_v24 = vadd.f32 %v1915_v49, %v413_v22 }
 0x18b   :  { %v440_v26 = vmax.f32 %v414_v24, 0.0 }
 0x18d   :  { %v1741_v27 = vpack.c.bf16 %v440_v26, %v439_v25 }
 0x18f   :  { %1881 = vst [vmem:[#allocation3 + $0x8] sm:$0xff] %v1741_v27  }
 0x190   :  { %v416_v28 = vpop.f32.mrf.mxu1 }
 0x191   :  { %v417_v29 = vadd.f32 %v1915_v49, %v416_v28 }
 0x193   :  { %v441_v32 = vmax.f32 %v417_v29, 0.0 }
 0x196   :  { %v1674_v53 = vld [vmem:[#allocation3 + $0x8] sm:$0xff] }
 0x198   :  { %v418_v30 = vpop.f32.mrf.mxu1 }
 0x199   :  { %v419_v31 = vadd.f32 %v1915_v49, %v418_v30 }
 0x19b   :  { %v442_v33 = vmax.f32 %v419_v31, 0.0 }
 0x19d   :  { %v1746_v34 = vpack.c.bf16 %v442_v33, %v441_v32 }
 0x19f   :  { %1882 = vst [vmem:[#allocation3 + $0x20] sm:$0xff] %v1746_v34   ;;  %v1916_v34 = vld [vmem:[%s2267_s7] ss:$0 sm:$0xff] }
 0x1a0   :  { %v421_v35 = vpop.f32.mrf.mxu1 }
 0x1a1   :  { %v422_v36 = vadd.f32 %v1915_v49, %v421_v35 }
 0x1a3   :  { %v443_v39 = vmax.f32 %v422_v36, 0.0 }
 0x1a6   :  { %v1675_v52 = vld [vmem:[#allocation3 + $0x20] sm:$0xff] }
 0x1a8   :  { %v423_v37 = vpop.f32.mrf.mxu1 }
 0x1a9   :  { %v424_v38 = vadd.f32 %v1915_v49, %v423_v37 }
 0x1ab   :  { %v444_v40 = vmax.f32 %v424_v38, 0.0 }
 0x1ad   :  { %v1751_v41 = vpack.c.bf16 %v444_v40, %v443_v39 }
 0x1af   :  { %1883 = vst [vmem:[#allocation3 + $0x28] sm:$0xff] %v1751_v41  }
 0x1b0   :  { %v426_v42 = vpop.f32.mrf.mxu1 }
 0x1b1   :  { %v427_v43 = vadd.f32 %v1915_v49, %v426_v42 }
 0x1b3   :  { %v445_v46 = vmax.f32 %v427_v43, 0.0 }
 0x1b6   :  { %v1676_v51 = vld [vmem:[#allocation3 + $0x28] sm:$0xff] }
 0x1b8   :  { %v428_v44 = vpop.f32.mrf.mxu1 }
 0x1b9   :  { %v429_v45 = vadd.f32 %v1915_v49, %v428_v44  ;;  %v1685_v49 = vld [vmem:[#allocation9 + $0x38] sm:$0xff] }
 0x1ba   :  { %668 = vmatpush.bf16.msra.mxu3 %v1685_v49 }
 0x1bb   :  { %v446_v47 = vmax.f32 %v429_v45, 0.0 }
 0x1bd   :  { %v1756_v48 = vpack.c.bf16 %v446_v47, %v445_v46 }
 0x1be   :  { %669 = vmatpush.bf16.msra.mxu3 %v1684_v58 }
 0x1bf   :  { %1884 = vst [vmem:[#allocation3 + $0x38] sm:$0xff] %v1756_v48  }
 0x1c2   :  { %670 = vmatpush.bf16.msra.mxu3 %v1683_v59 }
 0x1c6   :  { %v1677_v50 = vld [vmem:[#allocation3 + $0x38] sm:$0xff]  ;;  %671 = vmatpush.bf16.msra.mxu3 %v1682_v60 }
 0x1c7   :  { %559 = vmatpush.bf16.msra.mxu2 %v1677_v50 }
 0x1ca   :  { %672 = vmatpush.bf16.msra.mxu3 %v1681_v61 }
 0x1cb   :  { %560 = vmatpush.bf16.msra.mxu2 %v1676_v51 }
 0x1ce   :  { %673 = vmatpush.bf16.msra.mxu3 %v1680_v62 }
 0x1cf   :  { %561 = vmatpush.bf16.msra.mxu2 %v1675_v52 }
 0x1d2   :  { %674 = vmatpush.bf16.msra.mxu3 %v1679_v63 }
 0x1d3   :  { %562 = vmatpush.bf16.msra.mxu2 %v1674_v53 }
 0x1d6   :  { %675 = vmatpush.bf16.msra.mxu3 %v1678_v0 }
 0x1d7   :  { %563 = vmatpush.bf16.msra.mxu2 %v1673_v54 }
 0x1db   :  { %564 = vmatpush.bf16.msra.mxu2 %v1672_v55 }
 0x1df   :  { %565 = vmatpush.bf16.msra.mxu2 %v1671_v56 }
 0x1e3   :  { %566 = vmatpush.bf16.msra.mxu2 %v1670_v57 }
 0x1e6   :  { %567 = vmatmul.bf16.vlgmr.msra.gmra.mxu2 %v2194_v8 }
 0x1f6   :  { %572 = vmatmul.bf16.gmra.mxu2 %v2197_v9 }
 0x206   :  { %577 = vmatmul.bf16.gmra.mxu2 %v2200_v10 }
 0x216   :  { %582 = vmatmul.bf16.gmra.mxu2 %v2203_v11 }
 0x226   :  { %587 = vmatmul.bf16.gmra.mxu2 %v2206_v12 }
 0x236   :  { %592 = vmatmul.bf16.gmra.mxu2 %v2209_v15 }
 0x246   :  { %597 = vmatmul.bf16.gmra.mxu2 %v2212_v20 }
 0x256   :  { %602 = vmatmul.bf16.gmra.mxu2 %v2215_v23 }
 0x269   :  { %v568_v1 = vpop.f32.mrf.mxu2 }
 0x271   :  { %v570_v2 = vpop.f32.mrf.mxu2 }
 0x272   :  { %v608_v3 = vpack.c.bf16 %v570_v2, %v568_v1 }
 0x274   :  { %676 = vmatmul.bf16.vlgmr.msra.gmra.mxu3 %v608_v3 }
 0x279   :  { %v573_v4 = vpop.f32.mrf.mxu2 }
 0x281   :  { %v575_v5 = vpop.f32.mrf.mxu2 }
 0x282   :  { %v609_v6 = vpack.c.bf16 %v575_v5, %v573_v4 }
 0x284   :  { %681 = vmatmul.bf16.gmra.mxu3 %v609_v6 }
 0x289   :  { %v578_v7 = vpop.f32.mrf.mxu2 }
 0x291   :  { %v580_v13 = vpop.f32.mrf.mxu2 }
 0x292   :  { %v610_v14 = vpack.c.bf16 %v580_v13, %v578_v7 }
 0x294   :  { %686 = vmatmul.bf16.gmra.mxu3 %v610_v14 }
 0x299   :  { %v583_v16 = vpop.f32.mrf.mxu2 }
 0x2a1   :  { %v585_v17 = vpop.f32.mrf.mxu2 }
 0x2a2   :  { %v611_v18 = vpack.c.bf16 %v585_v17, %v583_v16 }
 0x2a4   :  { %691 = vmatmul.bf16.gmra.mxu3 %v611_v18 }
 0x2a9   :  { %v588_v19 = vpop.f32.mrf.mxu2 }
 0x2b1   :  { %v590_v21 = vpop.f32.mrf.mxu2 }
 0x2b2   :  { %v612_v22 = vpack.c.bf16 %v590_v21, %v588_v19 }
 0x2b4   :  { %696 = vmatmul.bf16.gmra.mxu3 %v612_v22 }
 0x2b9   :  { %v593_v24 = vpop.f32.mrf.mxu2 }
 0x2c1   :  { %v595_v25 = vpop.f32.mrf.mxu2 }
 0x2c2   :  { %v613_v26 = vpack.c.bf16 %v595_v25, %v593_v24 }
 0x2c4   :  { %701 = vmatmul.bf16.gmra.mxu3 %v613_v26 }
 0x2c9   :  { %v598_v27 = vpop.f32.mrf.mxu2 }
 0x2d1   :  { %v600_v28 = vpop.f32.mrf.mxu2 }
 0x2d2   :  { %v614_v29 = vpack.c.bf16 %v600_v28, %v598_v27 }
 0x2d4   :  { %706 = vmatmul.bf16.gmra.mxu3 %v614_v29 }
 0x2d9   :  { %v603_v30 = vpop.f32.mrf.mxu2 }
 0x2e1   :  { %v605_v31 = vpop.f32.mrf.mxu2 }
 0x2e2   :  { %v615_v32 = vpack.c.bf16 %v605_v31, %v603_v30 }
 0x2e4   :  { %711 = vmatmul.bf16.gmra.mxu3 %v615_v32 }
 0x2f7   :  { %v677_v33 = vpop.f32.mrf.mxu3 }
 0x2f8   :  { %v678_v35 = vadd.f32 %v1916_v34, %v677_v33 }
 0x2fa   :  { %v717_v38 = vmax.f32 %v678_v35, 0.0 }
 0x2ff   :  { %v679_v36 = vpop.f32.mrf.mxu3 }
 0x300   :  { %v680_v37 = vadd.f32 %v1916_v34, %v679_v36 }
 0x302   :  { %v718_v39 = vmax.f32 %v680_v37, 0.0 }
 0x304   :  { %v1761_v40 = vpack.c.bf16 %v718_v39, %v717_v38 }
 0x306   :  { %1762 = vst [vmem:[#allocation3 + $0x30] sm:$0xff] %v1761_v40  }
 0x307   :  { %v682_v41 = vpop.f32.mrf.mxu3 }
 0x308   :  { %v683_v42 = vadd.f32 %v1916_v34, %v682_v41 }
 0x30a   :  { %v719_v45 = vmax.f32 %v683_v42, 0.0 }
 0x30d   :  { %v1686_v42 = vld [vmem:[#allocation3 + $0x30] sm:$0xff] }
 0x30f   :  { %v684_v43 = vpop.f32.mrf.mxu3 }
 0x310   :  { %v685_v44 = vadd.f32 %v1916_v34, %v684_v43  ;;  %v1700_v43 = vld [vmem:[#allocation10 + $0x30] sm:$0xff] }
 0x312   :  { %v720_v46 = vmax.f32 %v685_v44, 0.0  ;;  %v1699_v44 = vld [vmem:[#allocation10 + $0x28] sm:$0xff] }
 0x314   :  { %v1766_v47 = vpack.c.bf16 %v720_v46, %v719_v45  ;;  %v1698_v45 = vld [vmem:[#allocation10 + $0x20] sm:$0xff]  ;;  %v1697_v46 = vld [vmem:[#allocation10 + $0x18] sm:$0xff] }
 0x316   :  { %1885 = vst [vmem:[#allocation3] sm:$0xff] %v1766_v47   ;;  %v1696_v47 = vld [vmem:[#allocation10 + $0x10] sm:$0xff] }
 0x317   :  { %v687_v48 = vpop.f32.mrf.mxu3 }
 0x318   :  { %v688_v50 = vadd.f32 %v1916_v34, %v687_v48  ;;  %v1695_v48 = vld [vmem:[#allocation10 + $0x8] sm:$0xff] }
 0x31a   :  { %v721_v53 = vmax.f32 %v688_v50, 0.0  ;;  %v1694_v50 = vld [vmem:[#allocation10] sm:$0xff] }
 0x31d   :  { %v1687_v41 = vld [vmem:[#allocation3] sm:$0xff] }
 0x31f   :  { %v689_v51 = vpop.f32.mrf.mxu3 }
 0x320   :  { %v690_v52 = vadd.f32 %v1916_v34, %v689_v51 }
 0x322   :  { %v722_v54 = vmax.f32 %v690_v52, 0.0 }
 0x324   :  { %v1771_v55 = vpack.c.bf16 %v722_v54, %v721_v53 }
 0x326   :  { %1886 = vst [vmem:[#allocation3 + $0x18] sm:$0xff] %v1771_v55  }
 0x327   :  { %v692_v56 = vpop.f32.mrf.mxu3 }
 0x328   :  { %v693_v57 = vadd.f32 %v1916_v34, %v692_v56 }
 0x32a   :  { %v723_v59 = vmax.f32 %v693_v57, 0.0 }
 0x32d   :  { %v1688_v40 = vld [vmem:[#allocation3 + $0x18] sm:$0xff] }
 0x32f   :  { %v694_v49 = vpop.f32.mrf.mxu3 }
 0x330   :  { %v695_v58 = vadd.f32 %v1916_v34, %v694_v49 }
 0x332   :  { %v724_v60 = vmax.f32 %v695_v58, 0.0 }
 0x334   :  { %v1776_v61 = vpack.c.bf16 %v724_v60, %v723_v59 }
 0x336   :  { %1887 = vst [vmem:[#allocation3 + $0x10] sm:$0xff] %v1776_v61  }
 0x337   :  { %v697_v62 = vpop.f32.mrf.mxu3 }
 0x338   :  { %v698_v63 = vadd.f32 %v1916_v34, %v697_v62 }
 0x33a   :  { %v725_v2 = vmax.f32 %v698_v63, 0.0 }
 0x33d   :  { %v1689_v39 = vld [vmem:[#allocation3 + $0x10] sm:$0xff] }
 0x33f   :  { %v699_v0 = vpop.f32.mrf.mxu3 }
 0x340   :  { %v700_v1 = vadd.f32 %v1916_v34, %v699_v0 }
 0x342   :  { %v726_v3 = vmax.f32 %v700_v1, 0.0 }
 0x344   :  { %v1781_v4 = vpack.c.bf16 %v726_v3, %v725_v2 }
 0x346   :  { %1888 = vst [vmem:[#allocation3 + $0x8] sm:$0xff] %v1781_v4  }
 0x347   :  { %v702_v5 = vpop.f32.mrf.mxu3 }
 0x348   :  { %v703_v6 = vadd.f32 %v1916_v34, %v702_v5 }
 0x34a   :  { %v727_v14 = vmax.f32 %v703_v6, 0.0 }
 0x34d   :  { %v1690_v38 = vld [vmem:[#allocation3 + $0x8] sm:$0xff] }
 0x34f   :  { %v704_v7 = vpop.f32.mrf.mxu3 }
 0x350   :  { %v705_v13 = vadd.f32 %v1916_v34, %v704_v7 }
 0x352   :  { %v728_v16 = vmax.f32 %v705_v13, 0.0 }
 0x354   :  { %v1786_v17 = vpack.c.bf16 %v728_v16, %v727_v14 }
 0x356   :  { %1889 = vst [vmem:[#allocation3 + $0x20] sm:$0xff] %v1786_v17   ;;  %v1917_v17 = vld [vmem:[%s2268_s8] ss:$0 sm:$0xff] }
 0x357   :  { %v707_v18 = vpop.f32.mrf.mxu3 }
 0x358   :  { %v708_v19 = vadd.f32 %v1916_v34, %v707_v18 }
 0x35a   :  { %v729_v24 = vmax.f32 %v708_v19, 0.0 }
 0x35d   :  { %v1691_v37 = vld [vmem:[#allocation3 + $0x20] sm:$0xff] }
 0x35f   :  { %v709_v21 = vpop.f32.mrf.mxu3 }
 0x360   :  { %v710_v22 = vadd.f32 %v1916_v34, %v709_v21 }
 0x362   :  { %v730_v25 = vmax.f32 %v710_v22, 0.0 }
 0x364   :  { %v1791_v26 = vpack.c.bf16 %v730_v25, %v729_v24 }
 0x366   :  { %1890 = vst [vmem:[#allocation3 + $0x28] sm:$0xff] %v1791_v26  }
 0x367   :  { %v712_v27 = vpop.f32.mrf.mxu3 }
 0x368   :  { %v713_v28 = vadd.f32 %v1916_v34, %v712_v27 }
 0x36a   :  { %v731_v31 = vmax.f32 %v713_v28, 0.0 }
 0x36d   :  { %v1692_v36 = vld [vmem:[#allocation3 + $0x28] sm:$0xff] }
 0x36f   :  { %v714_v29 = vpop.f32.mrf.mxu3 }
 0x370   :  { %v715_v30 = vadd.f32 %v1916_v34, %v714_v29  ;;  %v1701_v34 = vld [vmem:[#allocation10 + $0x38] sm:$0xff] }
 0x371   :  { %954 = vmatpush.bf16.msrb.mxu1 %v1701_v34 }
 0x372   :  { %v732_v32 = vmax.f32 %v715_v30, 0.0 }
 0x374   :  { %v1796_v33 = vpack.c.bf16 %v732_v32, %v731_v31 }
 0x375   :  { %955 = vmatpush.bf16.msrb.mxu1 %v1700_v43 }
 0x376   :  { %1891 = vst [vmem:[#allocation3 + $0x38] sm:$0xff] %v1796_v33  }
 0x379   :  { %956 = vmatpush.bf16.msrb.mxu1 %v1699_v44 }
 0x37d   :  { %v1693_v35 = vld [vmem:[#allocation3 + $0x38] sm:$0xff]  ;;  %957 = vmatpush.bf16.msrb.mxu1 %v1698_v45 }
 0x37e   :  { %845 = vmatpush.bf16.msrb.mxu0 %v1693_v35 }
 0x381   :  { %958 = vmatpush.bf16.msrb.mxu1 %v1697_v46 }
 0x382   :  { %846 = vmatpush.bf16.msrb.mxu0 %v1692_v36 }
 0x385   :  { %959 = vmatpush.bf16.msrb.mxu1 %v1696_v47 }
 0x386   :  { %847 = vmatpush.bf16.msrb.mxu0 %v1691_v37 }
 0x389   :  { %960 = vmatpush.bf16.msrb.mxu1 %v1695_v48 }
 0x38a   :  { %848 = vmatpush.bf16.msrb.mxu0 %v1690_v38 }
 0x38d   :  { %961 = vmatpush.bf16.msrb.mxu1 %v1694_v50 }
 0x38e   :  { %849 = vmatpush.bf16.msrb.mxu0 %v1689_v39 }
 0x392   :  { %850 = vmatpush.bf16.msrb.mxu0 %v1688_v40 }
 0x396   :  { %851 = vmatpush.bf16.msrb.mxu0 %v1687_v41 }
 0x39a   :  { %852 = vmatpush.bf16.msrb.mxu0 %v1686_v42 }
 0x39d   :  { %853 = vmatmul.bf16.vlgmr.msrb.gmra.mxu0 %v2194_v8 }
 0x3ad   :  { %858 = vmatmul.bf16.gmra.mxu0 %v2197_v9 }
 0x3bd   :  { %863 = vmatmul.bf16.gmra.mxu0 %v2200_v10 }
 0x3cd   :  { %868 = vmatmul.bf16.gmra.mxu0 %v2203_v11 }
 0x3dd   :  { %873 = vmatmul.bf16.gmra.mxu0 %v2206_v12 }
 0x3ed   :  { %878 = vmatmul.bf16.gmra.mxu0 %v2209_v15 }
 0x3fd   :  { %883 = vmatmul.bf16.gmra.mxu0 %v2212_v20 }
 0x40d   :  { %888 = vmatmul.bf16.gmra.mxu0 %v2215_v23 }
 0x41a   :  { %v854_v51 = vpop.f32.mrf.mxu0 }
 0x422   :  { %v856_v52 = vpop.f32.mrf.mxu0 }
 0x423   :  { %v894_v53 = vpack.c.bf16 %v856_v52, %v854_v51 }
 0x425   :  { %962 = vmatmul.bf16.vlgmr.msrb.gmra.mxu1 %v894_v53 }
 0x42a   :  { %v859_v54 = vpop.f32.mrf.mxu0 }
 0x432   :  { %v861_v55 = vpop.f32.mrf.mxu0 }
 0x433   :  { %v895_v56 = vpack.c.bf16 %v861_v55, %v859_v54 }
 0x435   :  { %967 = vmatmul.bf16.gmra.mxu1 %v895_v56 }
 0x43a   :  { %v864_v57 = vpop.f32.mrf.mxu0 }
 0x442   :  { %v866_v49 = vpop.f32.mrf.mxu0 }
 0x443   :  { %v896_v58 = vpack.c.bf16 %v866_v49, %v864_v57 }
 0x445   :  { %972 = vmatmul.bf16.gmra.mxu1 %v896_v58 }
 0x44a   :  { %v869_v59 = vpop.f32.mrf.mxu0 }
 0x452   :  { %v871_v60 = vpop.f32.mrf.mxu0 }
 0x453   :  { %v897_v61 = vpack.c.bf16 %v871_v60, %v869_v59 }
 0x455   :  { %977 = vmatmul.bf16.gmra.mxu1 %v897_v61 }
 0x45a   :  { %v874_v62 = vpop.f32.mrf.mxu0 }
 0x462   :  { %v876_v63 = vpop.f32.mrf.mxu0 }
 0x463   :  { %v898_v0 = vpack.c.bf16 %v876_v63, %v874_v62 }
 0x465   :  { %982 = vmatmul.bf16.gmra.mxu1 %v898_v0 }
 0x46a   :  { %v879_v1 = vpop.f32.mrf.mxu0 }
 0x472   :  { %v881_v2 = vpop.f32.mrf.mxu0 }
 0x473   :  { %v899_v3 = vpack.c.bf16 %v881_v2, %v879_v1 }
 0x475   :  { %987 = vmatmul.bf16.gmra.mxu1 %v899_v3 }
 0x47a   :  { %v884_v4 = vpop.f32.mrf.mxu0 }
 0x482   :  { %v886_v5 = vpop.f32.mrf.mxu0 }
 0x483   :  { %v900_v6 = vpack.c.bf16 %v886_v5, %v884_v4 }
 0x485   :  { %992 = vmatmul.bf16.gmra.mxu1 %v900_v6 }
 0x48a   :  { %v889_v7 = vpop.f32.mrf.mxu0 }
 0x492   :  { %v891_v13 = vpop.f32.mrf.mxu0 }
 0x493   :  { %v901_v14 = vpack.c.bf16 %v891_v13, %v889_v7 }
 0x495   :  { %997 = vmatmul.bf16.gmra.mxu1 %v901_v14 }
 0x4a2   :  { %v963_v16 = vpop.f32.mrf.mxu1 }
 0x4a3   :  { %v964_v18 = vadd.f32 %v1917_v17, %v963_v16 }
 0x4a5   :  { %v1003_v22 = vmax.f32 %v964_v18, 0.0 }
 0x4aa   :  { %v965_v19 = vpop.f32.mrf.mxu1 }
 0x4ab   :  { %v966_v21 = vadd.f32 %v1917_v17, %v965_v19 }
 0x4ad   :  { %v1004_v24 = vmax.f32 %v966_v21, 0.0 }
 0x4af   :  { %v1801_v25 = vpack.c.bf16 %v1004_v24, %v1003_v22 }
 0x4b1   :  { %1802 = vst [vmem:[#allocation3 + $0x30] sm:$0xff] %v1801_v25   ;;  %v1717_v25 = vld [vmem:[#allocation12 + $0x38] sm:$0xff] }
 0x4b2   :  { %v968_v26 = vpop.f32.mrf.mxu1  ;;  %1240 = vmatpush.bf16.msrb.mxu3 %v1717_v25 }
 0x4b3   :  { %v969_v27 = vadd.f32 %v1917_v17, %v968_v26 }
 0x4b5   :  { %v1005_v30 = vmax.f32 %v969_v27, 0.0 }
 0x4ba   :  { %v970_v28 = vpop.f32.mrf.mxu1 }
 0x4bb   :  { %v971_v29 = vadd.f32 %v1917_v17, %v970_v28  ;;  %v1716_v28 = vld [vmem:[#allocation12 + $0x30] sm:$0xff] }
 0x4bc   :  { %1241 = vmatpush.bf16.msrb.mxu3 %v1716_v28 }
 0x4bd   :  { %v1006_v31 = vmax.f32 %v971_v29, 0.0  ;;  %v1715_v29 = vld [vmem:[#allocation12 + $0x28] sm:$0xff] }
 0x4bf   :  { %v1806_v32 = vpack.c.bf16 %v1006_v31, %v1005_v30  ;;  %v1714_v30 = vld [vmem:[#allocation12 + $0x20] sm:$0xff]  ;;  %v1713_v31 = vld [vmem:[#allocation12 + $0x18] sm:$0xff] }
 0x4c0   :  { %1242 = vmatpush.bf16.msrb.mxu3 %v1715_v29 }
 0x4c1   :  { %1892 = vst [vmem:[#allocation3] sm:$0xff] %v1806_v32   ;;  %v1712_v32 = vld [vmem:[#allocation12 + $0x10] sm:$0xff] }
 0x4c2   :  { %v973_v33 = vpop.f32.mrf.mxu1 }
 0x4c3   :  { %v974_v35 = vadd.f32 %v1917_v17, %v973_v33 }
 0x4c4   :  { %1243 = vmatpush.bf16.msrb.mxu3 %v1714_v30 }
 0x4c5   :  { %v1007_v38 = vmax.f32 %v974_v35, 0.0 }
 0x4c8   :  { %v1703_v27 = vld [vmem:[#allocation3] sm:$0xff]  ;;  %1244 = vmatpush.bf16.msrb.mxu3 %v1713_v31 }
 0x4ca   :  { %v975_v36 = vpop.f32.mrf.mxu1 }
 0x4cb   :  { %v976_v37 = vadd.f32 %v1917_v17, %v975_v36 }
 0x4cc   :  { %1245 = vmatpush.bf16.msrb.mxu3 %v1712_v32 }
 0x4cd   :  { %v1008_v39 = vmax.f32 %v976_v37, 0.0 }
 0x4cf   :  { %v1811_v40 = vpack.c.bf16 %v1008_v39, %v1007_v38 }
 0x4d1   :  { %1893 = vst [vmem:[#allocation3 + $0x18] sm:$0xff] %v1811_v40  }
 0x4d2   :  { %v978_v41 = vpop.f32.mrf.mxu1 }
 0x4d3   :  { %v979_v42 = vadd.f32 %v1917_v17, %v978_v41 }
 0x4d5   :  { %v1009_v44 = vmax.f32 %v979_v42, 0.0 }
 0x4d8   :  { %v1704_v26 = vld [vmem:[#allocation3 + $0x18] sm:$0xff] }
 0x4da   :  { %v980_v34 = vpop.f32.mrf.mxu1 }
 0x4db   :  { %v981_v43 = vadd.f32 %v1917_v17, %v980_v34 }
 0x4dd   :  { %v1010_v45 = vmax.f32 %v981_v43, 0.0 }
 0x4df   :  { %v1816_v46 = vpack.c.bf16 %v1010_v45, %v1009_v44 }
 0x4e1   :  { %1894 = vst [vmem:[#allocation3 + $0x10] sm:$0xff] %v1816_v46  }
 0x4e2   :  { %v983_v47 = vpop.f32.mrf.mxu1 }
 0x4e3   :  { %v984_v48 = vadd.f32 %v1917_v17, %v983_v47 }
 0x4e5   :  { %v1011_v52 = vmax.f32 %v984_v48, 0.0 }
 0x4e8   :  { %v1705_v24 = vld [vmem:[#allocation3 + $0x10] sm:$0xff] }
 0x4ea   :  { %v985_v50 = vpop.f32.mrf.mxu1 }
 0x4eb   :  { %v986_v51 = vadd.f32 %v1917_v17, %v985_v50 }
 0x4ed   :  { %v1012_v53 = vmax.f32 %v986_v51, 0.0 }
 0x4ef   :  { %v1821_v54 = vpack.c.bf16 %v1012_v53, %v1011_v52  ;;  %v1918_v53 = vld [vmem:[%s2269_s9] ss:$0 sm:$0xff]  ;;  %s2105_s9 = smov [#allocation13]  }
 0x4f0   :  { %s1341_s26 = sshll.u32 %s2105_s9, 4  ;;  %s1342_s26 = int_to_ptr.vmem [resolvable:$true] %s1341_s26 }
 0x4f1   :  { %1895 = vst [vmem:[#allocation3 + $0x8] sm:$0xff] %v1821_v54  }
 0x4f2   :  { %v988_v55 = vpop.f32.mrf.mxu1 }
 0x4f3   :  { %v989_v56 = vadd.f32 %v1917_v17, %v988_v55 }
 0x4f5   :  { %v1013_v58 = vmax.f32 %v989_v56, 0.0 }
 0x4f8   :  { %v1706_v22 = vld [vmem:[#allocation3 + $0x8] sm:$0xff] }
 0x4fa   :  { %v990_v57 = vpop.f32.mrf.mxu1 }
 0x4fb   :  { %v991_v49 = vadd.f32 %v1917_v17, %v990_v57 }
 0x4fd   :  { %v1014_v59 = vmax.f32 %v991_v49, 0.0 }
 0x4ff   :  { %v1826_v60 = vpack.c.bf16 %v1014_v59, %v1013_v58 }
 0x501   :  { %1896 = vst [vmem:[#allocation3 + $0x20] sm:$0xff] %v1826_v60  }
 0x502   :  { %v993_v61 = vpop.f32.mrf.mxu1 }
 0x503   :  { %v994_v62 = vadd.f32 %v1917_v17, %v993_v61 }
 0x505   :  { %v1015_v1 = vmax.f32 %v994_v62, 0.0 }
 0x508   :  { %v1707_v21 = vld [vmem:[#allocation3 + $0x20] sm:$0xff] }
 0x50a   :  { %v995_v63 = vpop.f32.mrf.mxu1 }
 0x50b   :  { %v996_v0 = vadd.f32 %v1917_v17, %v995_v63 }
 0x50d   :  { %v1016_v2 = vmax.f32 %v996_v0, 0.0 }
 0x50f   :  { %v1831_v3 = vpack.c.bf16 %v1016_v2, %v1015_v1 }
 0x511   :  { %1897 = vst [vmem:[#allocation3 + $0x28] sm:$0xff] %v1831_v3  }
 0x512   :  { %v998_v4 = vpop.f32.mrf.mxu1 }
 0x513   :  { %v999_v5 = vadd.f32 %v1917_v17, %v998_v4 }
 0x515   :  { %v1017_v13 = vmax.f32 %v999_v5, 0.0 }
 0x518   :  { %v1708_v19 = vld [vmem:[#allocation3 + $0x28] sm:$0xff] }
 0x51a   :  { %v1000_v6 = vpop.f32.mrf.mxu1 }
 0x51b   :  { %v1001_v7 = vadd.f32 %v1917_v17, %v1000_v6  ;;  %v1702_v17 = vld [vmem:[#allocation3 + $0x30] sm:$0xff] }
 0x51d   :  { %v1018_v14 = vmax.f32 %v1001_v7, 0.0 }
 0x51f   :  { %v1836_v16 = vpack.c.bf16 %v1018_v14, %v1017_v13 }
 0x521   :  { %1898 = vst [vmem:[#allocation3 + $0x38] sm:$0xff] %v1836_v16  }
 0x528   :  { %v1709_v18 = vld [vmem:[#allocation3 + $0x38] sm:$0xff] }
 0x529   :  { %1131 = vmatpush.bf16.msrb.mxu2 %v1709_v18 }
 0x52d   :  { %1132 = vmatpush.bf16.msrb.mxu2 %v1708_v19 }
 0x531   :  { %1133 = vmatpush.bf16.msrb.mxu2 %v1707_v21 }
 0x535   :  { %1134 = vmatpush.bf16.msrb.mxu2 %v1706_v22 }
 0x539   :  { %1135 = vmatpush.bf16.msrb.mxu2 %v1705_v24 }
 0x53d   :  { %1136 = vmatpush.bf16.msrb.mxu2 %v1704_v26 }
 0x541   :  { %1137 = vmatpush.bf16.msrb.mxu2 %v1703_v27 }
 0x545   :  { %1138 = vmatpush.bf16.msrb.mxu2 %v1702_v17 }
 0x548   :  { %1139 = vmatmul.bf16.vlgmr.msrb.gmra.mxu2 %v2194_v8  ;;  %v1711_v8 = vld [vmem:[#allocation12 + $0x8] sm:$0xff] }
 0x549   :  { %1246 = vmatpush.bf16.msrb.mxu3 %v1711_v8 }
 0x558   :  { %1144 = vmatmul.bf16.gmra.mxu2 %v2197_v9  ;;  %v1710_v9 = vld [vmem:[#allocation12] sm:$0xff] }
 0x559   :  { %1247 = vmatpush.bf16.msrb.mxu3 %v1710_v9 }
 0x568   :  { %1149 = vmatmul.bf16.gmra.mxu2 %v2200_v10 }
 0x578   :  { %1154 = vmatmul.bf16.gmra.mxu2 %v2203_v11 }
 0x588   :  { %1159 = vmatmul.bf16.gmra.mxu2 %v2206_v12 }
 0x598   :  { %1164 = vmatmul.bf16.gmra.mxu2 %v2209_v15 }
 0x5a8   :  { %1169 = vmatmul.bf16.gmra.mxu2 %v2212_v20 }
 0x5b8   :  { %1174 = vmatmul.bf16.gmra.mxu2 %v2215_v23 }
 0x5cb   :  { %v1140_v10 = vpop.f32.mrf.mxu2 }
 0x5d3   :  { %v1142_v33 = vpop.f32.mrf.mxu2 }
 0x5d4   :  { %v1180_v35 = vpack.c.bf16 %v1142_v33, %v1140_v10 }
 0x5d6   :  { %1248 = vmatmul.bf16.vlgmr.msrb.gmra.mxu3 %v1180_v35 }
 0x5db   :  { %v1145_v11 = vpop.f32.mrf.mxu2 }
 0x5e3   :  { %v1147_v36 = vpop.f32.mrf.mxu2 }
 0x5e4   :  { %v1181_v37 = vpack.c.bf16 %v1147_v36, %v1145_v11 }
 0x5e6   :  { %1253 = vmatmul.bf16.gmra.mxu3 %v1181_v37 }
 0x5eb   :  { %v1150_v12 = vpop.f32.mrf.mxu2 }
 0x5f3   :  { %v1152_v38 = vpop.f32.mrf.mxu2 }
 0x5f4   :  { %v1182_v39 = vpack.c.bf16 %v1152_v38, %v1150_v12 }
 0x5f6   :  { %1258 = vmatmul.bf16.gmra.mxu3 %v1182_v39 }
 0x5fb   :  { %v1155_v15 = vpop.f32.mrf.mxu2 }
 0x603   :  { %v1157_v40 = vpop.f32.mrf.mxu2 }
 0x604   :  { %v1183_v41 = vpack.c.bf16 %v1157_v40, %v1155_v15 }
 0x606   :  { %1263 = vmatmul.bf16.gmra.mxu3 %v1183_v41 }
 0x60b   :  { %v1160_v20 = vpop.f32.mrf.mxu2 }
 0x613   :  { %v1162_v42 = vpop.f32.mrf.mxu2 }
 0x614   :  { %v1184_v34 = vpack.c.bf16 %v1162_v42, %v1160_v20 }
 0x616   :  { %1268 = vmatmul.bf16.gmra.mxu3 %v1184_v34 }
 0x61b   :  { %v1165_v23 = vpop.f32.mrf.mxu2 }
 0x623   :  { %v1167_v43 = vpop.f32.mrf.mxu2 }
 0x624   :  { %v1185_v44 = vpack.c.bf16 %v1167_v43, %v1165_v23 }
 0x626   :  { %1273 = vmatmul.bf16.gmra.mxu3 %v1185_v44 }
 0x62b   :  { %v1170_v45 = vpop.f32.mrf.mxu2 }
 0x633   :  { %v1172_v46 = vpop.f32.mrf.mxu2 }
 0x634   :  { %v1186_v47 = vpack.c.bf16 %v1172_v46, %v1170_v45 }
 0x636   :  { %1278 = vmatmul.bf16.gmra.mxu3 %v1186_v47 }
 0x63b   :  { %v1175_v48 = vpop.f32.mrf.mxu2 }
 0x643   :  { %v1177_v50 = vpop.f32.mrf.mxu2 }
 0x644   :  { %v1187_v51 = vpack.c.bf16 %v1177_v50, %v1175_v48 }
 0x646   :  { %1283 = vmatmul.bf16.gmra.mxu3 %v1187_v51 }
 0x659   :  { %v1249_v52 = vpop.f32.mrf.mxu3 }
 0x65a   :  { %v1250_v54 = vadd.f32 %v1918_v53, %v1249_v52 }
 0x65c   :  { %v1289_v57 = vmax.f32 %v1250_v54, 0.0 }
 0x661   :  { %v1251_v55 = vpop.f32.mrf.mxu3 }
 0x662   :  { %v1252_v56 = vadd.f32 %v1918_v53, %v1251_v55 }
 0x664   :  { %v1290_v49 = vmax.f32 %v1252_v56, 0.0 }
 0x666   :  { %v1841_v58 = vpack.c.bf16 %v1290_v49, %v1289_v57 }
 0x668   :  { %1842 = vst [vmem:[#allocation13] sm:$0xff] %v1841_v58  }
 0x669   :  { %v1254_v59 = vpop.f32.mrf.mxu3 }
 0x66a   :  { %v1255_v60 = vadd.f32 %v1918_v53, %v1254_v59 }
 0x66c   :  { %v1291_v63 = vmax.f32 %v1255_v60, 0.0 }
 0x671   :  { %v1256_v61 = vpop.f32.mrf.mxu3 }
 0x672   :  { %v1257_v62 = vadd.f32 %v1918_v53, %v1256_v61 }
 0x674   :  { %v1292_v0 = vmax.f32 %v1257_v62, 0.0 }
 0x676   :  { %v1846_v1 = vpack.c.bf16 %v1292_v0, %v1291_v63 }
 0x678   :  { %1899 = vst [vmem:[#allocation13 + $0x8] sm:$0xff] %v1846_v1  }
 0x679   :  { %v1259_v2 = vpop.f32.mrf.mxu3 }
 0x67a   :  { %v1260_v3 = vadd.f32 %v1918_v53, %v1259_v2 }
 0x67c   :  { %v1293_v6 = vmax.f32 %v1260_v3, 0.0 }
 0x681   :  { %v1261_v4 = vpop.f32.mrf.mxu3 }
 0x682   :  { %v1262_v5 = vadd.f32 %v1918_v53, %v1261_v4 }
 0x684   :  { %v1294_v7 = vmax.f32 %v1262_v5, 0.0 }
 0x686   :  { %v1851_v13 = vpack.c.bf16 %v1294_v7, %v1293_v6 }
 0x688   :  { %1900 = vst [vmem:[#allocation13 + $0x10] sm:$0xff] %v1851_v13  }
 0x689   :  { %v1264_v14 = vpop.f32.mrf.mxu3 }
 0x68a   :  { %v1265_v16 = vadd.f32 %v1918_v53, %v1264_v14 }
 0x68c   :  { %v1295_v21 = vmax.f32 %v1265_v16, 0.0 }
 0x691   :  { %v1266_v18 = vpop.f32.mrf.mxu3 }
 0x692   :  { %v1267_v19 = vadd.f32 %v1918_v53, %v1266_v18 }
 0x694   :  { %v1296_v22 = vmax.f32 %v1267_v19, 0.0 }
 0x696   :  { %v1856_v24 = vpack.c.bf16 %v1296_v22, %v1295_v21 }
 0x698   :  { %1901 = vst [vmem:[#allocation13 + $0x18] sm:$0xff] %v1856_v24  }
 0x699   :  { %v1269_v25 = vpop.f32.mrf.mxu3 }
 0x69a   :  { %v1270_v26 = vadd.f32 %v1918_v53, %v1269_v25 }
 0x69c   :  { %v1297_v28 = vmax.f32 %v1270_v26, 0.0 }
 0x6a1   :  { %v1271_v27 = vpop.f32.mrf.mxu3 }
 0x6a2   :  { %v1272_v17 = vadd.f32 %v1918_v53, %v1271_v27 }
 0x6a4   :  { %v1298_v29 = vmax.f32 %v1272_v17, 0.0 }
 0x6a6   :  { %v1861_v30 = vpack.c.bf16 %v1298_v29, %v1297_v28 }
 0x6a8   :  { %1902 = vst [vmem:[#allocation13 + $0x20] sm:$0xff] %v1861_v30  }
 0x6a9   :  { %v1274_v31 = vpop.f32.mrf.mxu3 }
 0x6aa   :  { %v1275_v32 = vadd.f32 %v1918_v53, %v1274_v31 }
 0x6ac   :  { %v1299_v10 = vmax.f32 %v1275_v32, 0.0 }
 0x6b1   :  { %v1276_v8 = vpop.f32.mrf.mxu3 }
 0x6b2   :  { %v1277_v9 = vadd.f32 %v1918_v53, %v1276_v8 }
 0x6b4   :  { %v1300_v33 = vmax.f32 %v1277_v9, 0.0 }
 0x6b6   :  { %v1866_v35 = vpack.c.bf16 %v1300_v33, %v1299_v10 }
 0x6b8   :  { %1903 = vst [vmem:[#allocation13 + $0x28] sm:$0xff] %v1866_v35  }
 0x6b9   :  { %v1279_v11 = vpop.f32.mrf.mxu3 }
 0x6ba   :  { %v1280_v36 = vadd.f32 %v1918_v53, %v1279_v11 }
 0x6bc   :  { %v1301_v38 = vmax.f32 %v1280_v36, 0.0 }
 0x6c1   :  { %v1281_v37 = vpop.f32.mrf.mxu3 }
 0x6c2   :  { %v1282_v12 = vadd.f32 %v1918_v53, %v1281_v37 }
 0x6c4   :  { %v1302_v39 = vmax.f32 %v1282_v12, 0.0 }
 0x6c6   :  { %v1871_v15 = vpack.c.bf16 %v1302_v39, %v1301_v38 }
 0x6c8   :  { %1904 = vst [vmem:[#allocation13 + $0x30] sm:$0xff] %v1871_v15  }
 0x6c9   :  { %v1284_v40 = vpop.f32.mrf.mxu3 }
 0x6ca   :  { %v1285_v41 = vadd.f32 %v1918_v53, %v1284_v40 }
 0x6cc   :  { %v1303_v34 = vmax.f32 %v1285_v41, 0.0 }
 0x6d1   :  { %v1286_v20 = vpop.f32.mrf.mxu3 }
 0x6d2   :  { %v1287_v42 = vadd.f32 %v1918_v53, %v1286_v20 }
 0x6d4   :  { %v1304_v23 = vmax.f32 %v1287_v42, 0.0 }
 0x6d6   :  { %v1876_v43 = vpack.c.bf16 %v1304_v23, %v1303_v34 }
 0x6d8   :  { %1905 = vst [vmem:[#allocation13 + $0x38] sm:$0xff] %v1876_v43  }
 0x6d9   :  { %1349 = dma.vmem_to_hbm [thread:$0]  %s1342_s26, 1024, %s1344_s27, [#allocation6], %s2098_s21, %s2098_s21, %s2099_s22  }
 0x6da   :  { %2095 = dma.done.wait [#allocation6], 1024  }
 0x6db   :  { %2096 = vsyncadd [#allocation6], 4294966272 }
 0x6dc   :  { %1354 = vsyncpa [#allocation5], 1 }
 0x6dd   :  { %1355 = vsyncpa [#allocation8], 1 }
 0x6de   :  { %1356 = vsyncpa [#allocation11], 1 }
 0x6df   :  { %1357 = vsyncpa [#allocation6], 1 }

</bundles_post_ra>
